<compile_context>
chip_gen: v7x
topology: tpu7x:2x2x1
jax: 0.10.0
libtpu: 0.0.40
codegen_flags: <defaults>
</compile_context>

<pallas_src>
import functools
import math

import jax
import jax.numpy as jnp
from jax.experimental import pallas as pl
from jax.experimental.pallas import tpu as pltpu


def sinusoidal_pe(max_len, d_model, dtype=jnp.float32):
    """Deterministic sinusoidal init, identical to sinusoidal_init_ in the module."""
    position = jnp.arange(max_len, dtype=jnp.float32)[:, None]                  # (S, 1)
    div_term = jnp.exp(
        -math.log(10000.0) * jnp.arange(0, d_model, 2, dtype=jnp.float32) / d_model
    )                                                                            # (D/2,)
    pe = jnp.zeros((max_len, d_model), dtype=jnp.float32)
    pe = pe.at[:, 0::2].set(jnp.sin(position * div_term))
    pe = pe.at[:, 1::2].set(jnp.cos(position * div_term))
    return pe.astype(dtype)


# ----------------------------- kernels -------------------------------------


def _pe_add_kernel(x_ref, pe_ref, o_ref):
    # Eval / inference path: dropout is identity.  Pure dense elementwise add
    # on a lane-dense (ts, B*D) block; pe is already in x's dtype.
    o_ref[...] = x_ref[...] + pe_ref[...]


def _pe_add_dropout_kernel(x_ref, pe_ref, bits_ref, o_ref, *, threshold, scale):
    # Training path: add positional encoding, then inverted dropout.
    # keep  <=>  bits >= floor(p * 2^32)    (P(keep) = 1 - p)
    y = x_ref[...] + pe_ref[...]
    keep = bits_ref[...] >= jnp.uint32(threshold)
    o_ref[...] = jnp.where(keep, y * jnp.asarray(scale, dtype=y.dtype),
                           jnp.zeros_like(y))


# ----------------------------- wrapper --------------------------------------


def _auto_ts(n_rows, n_cols, itemsize, target_block_bytes=2 << 20):
    """Pick a row-tile size: ~2 MiB per operand block, multiple of 8 sublanes,
    and at least two grid steps when the problem is big enough (v7x megacore +
    pipelining).  Partial last tiles are handled by the cdiv grid."""
    if n_rows <= 8:
        return int(n_rows)
    ts = max(8, target_block_bytes // max(1, n_cols * itemsize))
    ts = max(8, (ts // 8) * 8)
    if n_rows >= 16:
        half = max(8, (n_rows // 2 // 8) * 8)   # keep >= 2 grid steps
        ts = min(ts, half)
    return int(min(ts, n_rows))


def positional_encoding(x, pe, *, dropout_p=0.1, training=False, key=None,
                        ts=None, batch_first=False):
    """Forward pass of PositionalEncoding.

    x  : [S, B, D] if not batch_first else [B, S, D]
    pe : [max_len, D] sinusoidal table (max_len >= S)
    """
    dtype = x.dtype

    if batch_first:
        B, S, D = x.shape
        x2 = x.reshape(B * S, D)
        pe2 = jnp.tile(pe[:S].astype(dtype), (B, 1))            # (B*S, D)
    else:
        S, B, D = x.shape
        # Lane-dense layout: fold the batch into the lane dimension.
        x2 = x.reshape(S, B * D)
        pe2 = jnp.tile(pe[:S].astype(dtype), (1, B))            # (S, B*D)

    n_rows, n_cols = x2.shape

    if ts is None:
        ts = _auto_ts(n_rows, n_cols, jnp.dtype(dtype).itemsize)
    grid = (pl.cdiv(n_rows, ts),)

    def row_block():
        return pl.BlockSpec((ts, n_cols), lambda i: (i, 0))

    cparams = pltpu.CompilerParams(
        dimension_semantics=("parallel",),
        vmem_limit_bytes=32 * 1024 * 1024,
    )

    if training and dropout_p > 0.0:
        if key is None:
            key = jax.random.PRNGKey(0)
        bits = jax.random.bits(key, (n_rows, n_cols), dtype=jnp.uint32)
        threshold = min(int(round(float(dropout_p) * (1 << 32))), (1 << 32) - 1)
        scale = 1.0 / (1.0 - float(dropout_p))
        kernel = functools.partial(_pe_add_dropout_kernel,
                                   threshold=threshold, scale=scale)
        out2 = pl.pallas_call(
            kernel,
            out_shape=jax.ShapeDtypeStruct((n_rows, n_cols), dtype),
            grid=grid,
            in_specs=[row_block(), row_block(), row_block()],
            out_specs=row_block(),
            compiler_params=cparams,
        )(x2, pe2, bits)
    else:
        out2 = pl.pallas_call(
            _pe_add_kernel,
            out_shape=jax.ShapeDtypeStruct((n_rows, n_cols), dtype),
            grid=grid,
            in_specs=[row_block(), row_block()],
            out_specs=row_block(),
            compiler_params=cparams,
        )(x2, pe2)

    return out2.reshape(x.shape)


# ----------------------------- demo / check ---------------------------------


if __name__ == "__main__":
    # Small shapes consistent with the module's forward: [S, B, D]
    S, B, D = 8, 2, 32
    MAX_LEN = 64  # stand-in for max_len=5000 at small scale

    key = jax.random.PRNGKey(0)
    kx, kd = jax.random.split(key)
    x = jax.random.normal(kx, (S, B, D), dtype=jnp.float32)

    pe = sinusoidal_pe(MAX_LEN, D)

    # Eval-mode forward (dropout is identity), fully deterministic.
    out = positional_encoding(x, pe, dropout_p=0.1, training=False)
    out = jax.block_until_ready(out)

    ref = x + pe[:S][:, None, :]
    assert out.shape == (S, B, D)
    assert jnp.allclose(out, ref, atol=1e-6, rtol=1e-6)

    # Training (dropout) path: same bits / threshold as the wrapper uses.
    p = 0.1
    out_tr = positional_encoding(x, pe, dropout_p=p, training=True, key=kd)
    out_tr = jax.block_until_ready(out_tr)

    bits_ref = jax.random.bits(kd, (S, B * D), dtype=jnp.uint32).reshape(S, B, D)
    thr = jnp.uint32(min(int(round(p * (1 << 32))), (1 << 32) - 1))
    keep_ref = bits_ref >= thr
    ref_tr = jnp.where(keep_ref, (x + pe[:S][:, None, :]) * (1.0 / (1.0 - p)), 0.0)
    assert out_tr.shape == (S, B, D)
    assert jnp.allclose(out_tr, ref_tr, atol=1e-5, rtol=1e-5)

    print("KERNEL_OK")
</pallas_src>

<mosaic_0001>
module attributes {stable_mosaic.version = 11 : i64} {
  func.func @_pe_add_kernel(%arg0: i32, %arg1: memref<8x64xf32, #tpu.memory_space<vmem>>, %arg2: memref<8x64xf32, #tpu.memory_space<vmem>>, %arg3: memref<8x64xf32, #tpu.memory_space<vmem>>) attributes {dimension_semantics = [#tpu.dimension_semantics<parallel>], iteration_bounds = array<i64: 1>, scalar_prefetch = 0 : i64, scratch_operands = 0 : i64, tpu.core_type = #tpu.core_type<tc>, window_params = [{transform_indices = @transform_0, window_bounds = array<i64: 8, 64>}, {transform_indices = @transform_1, window_bounds = array<i64: 8, 64>}, {transform_indices = @transform_2, window_bounds = array<i64: 8, 64>}]} {
    %c0 = arith.constant 0 : index
    %c0_0 = arith.constant 0 : index
    %0 = vector.load %arg1[%c0, %c0_0] : memref<8x64xf32, #tpu.memory_space<vmem>>, vector<8x64xf32>
    %c0_1 = arith.constant 0 : index
    %c0_2 = arith.constant 0 : index
    %1 = vector.load %arg2[%c0_1, %c0_2] : memref<8x64xf32, #tpu.memory_space<vmem>>, vector<8x64xf32>
    %2 = arith.addf %0, %1 : vector<8x64xf32>
    %c0_3 = arith.constant 0 : index
    %c0_4 = arith.constant 0 : index
    %3 = vector.load %arg3[%c0_3, %c0_4] : memref<8x64xf32, #tpu.memory_space<vmem>>, vector<8x64xf32>
    tpu.vector_store %arg3[%c0_3, %c0_4], %2 {strides = array<i32>} : memref<8x64xf32, #tpu.memory_space<vmem>>, vector<8x64xf32>,
    return
  }
  func.func @transform_0(%arg0: i32) -> (i32, i32) {
    %c0_i32 = arith.constant 0 : i32
    %c0_i32_0 = arith.constant 0 : i32
    return %arg0, %c0_i32 : i32, i32
  }
  func.func @transform_1(%arg0: i32) -> (i32, i32) {
    %c0_i32 = arith.constant 0 : i32
    %c0_i32_0 = arith.constant 0 : i32
    return %arg0, %c0_i32 : i32, i32
  }
  func.func @transform_2(%arg0: i32) -> (i32, i32) {
    %c0_i32 = arith.constant 0 : i32
    %c0_i32_0 = arith.constant 0 : i32
    return %arg0, %c0_i32 : i32, i32
  }
}

</mosaic_0001>

<bundles_post_ra>
// kernel: tpu_custom_call.1
= control target key start
LH: loop header
LB: loop body
LE: loop exit
PB: predicated region body
PF: predicated region fallthrough
CT: control target
= control target key end

     0   :  { %7 = vsyncpa [#allocation3], 0  ;;  %s186_s0 = inlined_call_operand.hbm [shape: f32[8,64], index: 0, kind: input, shape index: {}]   ;;  %s187_s1 = inlined_call_operand.hbm [shape: f32[8,64], index: 1, kind: input, shape index: {}]   ;;  %s188_s2 = inlined_call_operand.hbm [shape: f32[8,64], index: 2, kind: output, shape index: {}]  }
   0x1   :  { %8 = vsyncpa [#allocation6], 0 }
   0x2   :  { %9 = vsyncpa [#allocation4], 0  ;;  %s132_s9 = smov [#allocation2]   ;;  %s133_s11 = smov [#allocation5]  }
   0x3   :  { %s16_s10 = sshll.u32 %s132_s9, 4  ;;  %s26_s12 = sshll.u32 %s133_s11, 4  ;;  %s17_s10 = int_to_ptr.vmem [resolvable:$true] %s16_s10  ;;  %s27_s12 = int_to_ptr.vmem [resolvable:$true] %s26_s12 }
   0x4   :  { %s60_s15 = scalar_lea.hbm %s186_s0, 128 }
   0x5   :  { %p61_p0 = scmp.ne.s32.totalorder %s186_s0, %s60_s15  ;;  %p64_p1 = scmp.lt.u32.totalorder %s60_s15, %s186_s0 }
   0x7   :  { %p66_p2 = pnand %p64_p1, %p61_p0 }
   0x9   :  { %69 = shalt.err (!%p66_p2)
}
   0xa   :  { %s70_s20 = scalar_lea.vmem %s17_s10, 128  ;;  %p75_p4 = scmp.lt.s32.totalorder %s17_s10, %s17_s10 }
   0xb   :  { %p71_p3 = scmp.ne.s32.totalorder %s17_s10, %s70_s20  ;;  %p76_p5 = scmp.lt.s32.totalorder %s70_s20, %s70_s20 }
   0xd   :  { %p77_p6 = por %p76_p5, %p75_p4 }
   0xf   :  { %p78_p7 = pnand %p77_p6, %p71_p3 }
  0x11   :  { %81 = shalt.err (!%p78_p7)
}
  0x12   :  { %19 = dma.hbm_to_vmem [thread:$0]  %s186_s0, 128, %s17_s10, [#allocation3]  }
  0x13   :  { %s82_s25 = scalar_lea.hbm %s187_s1, 128 }
  0x14   :  { %p83_p8 = scmp.ne.s32.totalorder %s187_s1, %s82_s25  ;;  %p86_p9 = scmp.lt.u32.totalorder %s82_s25, %s187_s1 }
  0x16   :  { %p88_p10 = pnand %p86_p9, %p83_p8 }
  0x18   :  { %91 = shalt.err (!%p88_p10)
}
  0x19   :  { %s92_s30 = scalar_lea.vmem %s27_s12, 128  ;;  %p97_p12 = scmp.lt.s32.totalorder %s27_s12, %s27_s12 }
  0x1a   :  { %p93_p11 = scmp.ne.s32.totalorder %s27_s12, %s92_s30  ;;  %p98_p13 = scmp.lt.s32.totalorder %s92_s30, %s92_s30 }
  0x1c   :  { %p99_p0 = por %p98_p13, %p97_p12 }
  0x1e   :  { %p100_p1 = pnand %p99_p0, %p93_p11 }
  0x20   :  { %103 = shalt.err (!%p100_p1)
}
  0x21   :  { %29 = dma.hbm_to_vmem [thread:$0]  %s187_s1, 128, %s27_s12, [#allocation6]  }
  0x22   :  { %126 = dma.done.wait [#allocation3], 128  }
  0x23   :  { %127 = vsyncadd [#allocation3], 4294967168 }
  0x24   :  { %128 = dma.done.wait [#allocation6], 128  }
  0x25   :  { %129 = vsyncadd [#allocation6], 4294967168  ;;  %s134_s4 = smov [#allocation7]   ;;  %v36_v0 = vld [vmem:[#allocation2] sm:$0xff]  ;;  %v37_v1 = vld [vmem:[#allocation5] sm:$0xff]  ;;  %vm39_vm0 = vcmask 523264  }
  0x26   :  { %s47_s5 = sshll.u32 %s134_s4, 4  ;;  %v38_v2 = vadd.f32 %v37_v1, %v36_v0  ;;  %s48_s5 = int_to_ptr.vmem [resolvable:$true] %s47_s5 }
  0x27   :  { %s104_s6 = scalar_lea.vmem %s48_s5, 128  ;;  %p109_p3 = scmp.lt.s32.totalorder %s48_s5, %s48_s5 }
  0x28   :  { %40 = vst.msk [vmem:[#allocation7] sm:$0xff] %vm39_vm0, %v38_v2  ;;  %p105_p2 = scmp.ne.s32.totalorder %s48_s5, %s104_s6  ;;  %p110_p4 = scmp.lt.s32.totalorder %s104_s6, %s104_s6 }
  0x2a   :  { %p111_p5 = por %p110_p4, %p109_p3 }
  0x2c   :  { %p112_p6 = pnand %p111_p5, %p105_p2 }
  0x2e   :  { %115 = shalt.err (!%p112_p6)
}
  0x2f   :  { %s116_s8 = scalar_lea.hbm %s188_s2, 128 }
  0x30   :  { %p117_p7 = scmp.ne.s32.totalorder %s188_s2, %s116_s8  ;;  %p120_p8 = scmp.lt.u32.totalorder %s116_s8, %s188_s2 }
  0x32   :  { %p122_p9 = pnand %p120_p8, %p117_p7 }
  0x34   :  { %125 = shalt.err (!%p122_p9)
}
  0x35   :  { %50 = dma.vmem_to_hbm [thread:$0]  %s48_s5, 128, %s188_s2, [#allocation4]  }
  0x36   :  { %130 = dma.done.wait [#allocation4], 128  }
  0x37   :  { %131 = vsyncadd [#allocation4], 4294967168 }
  0x38   :  { %54 = vsyncpa [#allocation3], 1 }
  0x39   :  { %55 = vsyncpa [#allocation6], 1 }
  0x3a   :  { %56 = vsyncpa [#allocation4], 1 }

</bundles_post_ra>
